<compile_context>
chip_gen: v5e
topology: v5e:2x2
jax: 0.10.0
libtpu: 0.0.40
codegen_flags: <defaults>
</compile_context>

<pallas_src>
import functools
from math import sqrt

import jax
import jax.numpy as jnp
from jax import lax
from jax.experimental import pallas as pl
from jax.experimental.pallas import tpu as pltpu


def _attention_kernel(x_ref, wqkv_ref, wo_ref, o_ref, ctx_ref,
                      *, n_heads: int, d_head: int, d_model: int,
                      inv_scale: float):
    """One batch element per grid step.

    x_ref    : (1, L, D)   VMEM  bf16
    wqkv_ref : (D, 3D)     VMEM  bf16  = [Wq^T | Wk^T | Wv^T]
    wo_ref   : (D, D)      VMEM  bf16  = Wo^T
    o_ref    : (1, L, D)   VMEM  f32
    ctx_ref  : (L, D)      VMEM  f32 scratch (concatenated head contexts)
    """
    x = x_ref[0]  # (L, D) bf16

    # Fused Q/K/V projection: one MXU contraction instead of three.
    qkv = jnp.dot(x, wqkv_ref[...], preferred_element_type=jnp.float32)  # (L, 3D) f32
    qkv = qkv.astype(jnp.bfloat16)  # bf16 operands for the attention matmuls

    # Static loop over heads (n_heads is small); each head writes its context
    # directly into the (L, D) scratch slab at its column offset.
    for h in range(n_heads):
        lo = h * d_head
        q_h = qkv[:, lo:lo + d_head]                              # (L, d)
        k_h = qkv[:, d_model + lo:d_model + lo + d_head]          # (L, d)
        v_h = qkv[:, 2 * d_model + lo:2 * d_model + lo + d_head]  # (L, d)

        # scores = (q @ k^T) / scale, expressed as a contraction over the last
        # axis of both operands — no explicit transpose of k.
        s = lax.dot_general(
            q_h, k_h,
            dimension_numbers=(((1,), (1,)), ((), ())),
            preferred_element_type=jnp.float32) * inv_scale       # (L, L) f32

        # Numerically stable softmax; divide moved to the EUP via reciprocal.
        m = jnp.max(s, axis=-1, keepdims=True)
        e = jnp.exp(s - m)
        denom = jnp.sum(e, axis=-1, keepdims=True)
        p = e * pl.reciprocal(denom, approx=True)                 # (L, L) f32
        # TODO(synk): dropout is identity here (p=0.0); stateful PRNG dropout omitted.

        ctx_ref[:, lo:lo + d_head] = jnp.dot(
            p.astype(jnp.bfloat16), v_h,
            preferred_element_type=jnp.float32)                   # (L, d) f32

    # Output projection over the lane-dense context slab.
    ctx = ctx_ref[...].astype(jnp.bfloat16)                       # (L, D)
    o_ref[0] = jnp.dot(ctx, wo_ref[...],
                       preferred_element_type=jnp.float32)        # (L, D) f32


def attention_pallas(x, wq, wk, wv, wo, *, n_heads: int):
    B, L, D = x.shape
    assert D % n_heads == 0
    d_head = D // n_heads
    inv_scale = 1.0 / sqrt(D / n_heads)

    compute_dtype = jnp.bfloat16
    # Host-side layout plumbing (done once, outside the kernel):
    #   - pre-transpose PyTorch (out, in) weights so the kernel contracts over
    #     the last axis with no in-kernel transposes,
    #   - fuse Q/K/V into a single (D, 3D) weight,
    #   - cast matmul operands to bf16 (MXU-native on v5e/v6e/v7x).
    w_qkv = jnp.concatenate([wq.T, wk.T, wv.T], axis=1).astype(compute_dtype)  # (D, 3D)
    wo_t = wo.T.astype(compute_dtype)                                           # (D, D)
    x_c = x.astype(compute_dtype)

    kernel = functools.partial(
        _attention_kernel,
        n_heads=n_heads, d_head=d_head, d_model=D, inv_scale=inv_scale)

    return pl.pallas_call(
        kernel,
        out_shape=jax.ShapeDtypeStruct((B, L, D), jnp.float32),
        grid_spec=pltpu.PrefetchScalarGridSpec(
            num_scalar_prefetch=0,
            grid=(B,),
            in_specs=[
                pl.BlockSpec((1, L, D), lambda b: (b, 0, 0)),    # x: one batch element
                pl.BlockSpec((D, 3 * D), lambda b: (0, 0)),      # fused [Wq^T|Wk^T|Wv^T]
                pl.BlockSpec((D, D), lambda b: (0, 0)),          # Wo^T
            ],
            out_specs=pl.BlockSpec((1, L, D), lambda b: (b, 0, 0)),
            scratch_shapes=[pltpu.VMEM((L, D), jnp.float32)],    # head-context slab
        ),
        compiler_params=pltpu.CompilerParams(
            dimension_semantics=("parallel",)),
    )(x_c, w_qkv, wo_t)


def attention_reference(x, wq, wk, wv, wo, *, n_heads: int):
    """Pure-JAX f32 reference mirroring the PyTorch forward exactly."""
    B, L, D = x.shape
    d_head = D // n_heads
    scale = sqrt(D / n_heads)

    def split(y):  # 'b l (n d) -> b n l d'
        return y.reshape(B, L, n_heads, d_head).transpose(0, 2, 1, 3)

    q = split(x @ wq.T)
    k = split(x @ wk.T)
    v = split(x @ wv.T)

    s = jnp.einsum("bnld,bnmd->bnlm", q, k) / scale
    p = jax.nn.softmax(s, axis=-1)
    ctx = jnp.einsum("bnlm,bnmd->bnld", p, v)           # (B, n, L, d)
    ctx = ctx.transpose(0, 2, 1, 3).reshape(B, L, D)    # 'b n l d -> b l (n d)'
    return ctx @ wo.T


if __name__ == "__main__":
    # Small shapes consistent with the module: B=2, L=8, d_model=32, n_heads=4
    B, L, D, n_heads = 2, 8, 32, 4

    key = jax.random.PRNGKey(0)
    kx, kq, kk, kv, ko = jax.random.split(key, 5)

    x = jax.random.normal(kx, (B, L, D), dtype=jnp.float32)

    # Deterministic parameter init (uniform(-1/sqrt(D), 1/sqrt(D)), PyTorch-Linear-like)
    bound = 1.0 / sqrt(D)
    wq = jax.random.uniform(kq, (D, D), jnp.float32, -bound, bound)
    wk = jax.random.uniform(kk, (D, D), jnp.float32, -bound, bound)
    wv = jax.random.uniform(kv, (D, D), jnp.float32, -bound, bound)
    wo = jax.random.uniform(ko, (D, D), jnp.float32, -bound, bound)

    out = attention_pallas(x, wq, wk, wv, wo, n_heads=n_heads)
    out = jax.block_until_ready(out)

    ref = attention_reference(x, wq, wk, wv, wo, n_heads=n_heads)
    assert out.shape == (B, L, D)
    # bf16 matmul operands + approx reciprocal => compare against the f32
    # reference with a correspondingly loose tolerance.
    assert jnp.allclose(out, ref, atol=3e-2, rtol=3e-2), "Pallas output mismatch"

    print("KERNEL_OK")
</pallas_src>

<mosaic_0001>
module attributes {stable_mosaic.version = 11 : i64} {
  func.func @_attention_kernel(%arg0: i32, %arg1: memref<1x8x32xbf16, #tpu.memory_space<vmem>>, %arg2: memref<32x96xbf16, #tpu.memory_space<vmem>>, %arg3: memref<32x32xbf16, #tpu.memory_space<vmem>>, %arg4: memref<1x8x32xf32, #tpu.memory_space<vmem>>, %arg5: memref<8x32xf32, #tpu.memory_space<vmem>>) attributes {dimension_semantics = [#tpu.dimension_semantics<parallel>], iteration_bounds = array<i64: 2>, scalar_prefetch = 0 : i64, scratch_operands = 1 : i64, tpu.core_type = #tpu.core_type<tc>, window_params = [{transform_indices = @transform_0, window_bounds = array<i64: 1, 8, 32>}, {pipeline_mode = #tpu.pipeline_mode<synchronous>, transform_indices = @transform_1, window_bounds = array<i64: 32, 96>}, {pipeline_mode = #tpu.pipeline_mode<synchronous>, transform_indices = @transform_2, window_bounds = array<i64: 32, 32>}, {transform_indices = @transform_3, window_bounds = array<i64: 1, 8, 32>}]} {
    %c0 = arith.constant 0 : index
    %c0_0 = arith.constant 0 : index
    %c0_1 = arith.constant 0 : index
    %0 = vector.load %arg1[%c0, %c0_0, %c0_1] : memref<1x8x32xbf16, #tpu.memory_space<vmem>>, vector<1x8x32xbf16>
    %1 = vector.shape_cast %0 : vector<1x8x32xbf16> to vector<8x32xbf16>
    %c0_2 = arith.constant 0 : index
    %c0_3 = arith.constant 0 : index
    %2 = vector.load %arg2[%c0_2, %c0_3] : memref<32x96xbf16, #tpu.memory_space<vmem>>, vector<32x96xbf16>
    %cst = arith.constant dense<0.000000e+00> : vector<8x96xf32>
    %3 = tpu.matmul %1, %2, %cst {dimension_numbers = #tpu.dot_dimension_numbers<[1], [0], [0], [1], [0, 0, 1, 1], [], []>} : vector<8x32xbf16>, vector<32x96xbf16>, vector<8x96xf32> -> vector<8x96xf32>
    %4 = arith.truncf %3 : vector<8x96xf32> to vector<8x96xbf16>
    %5 = vector.extract_strided_slice %4 {offsets = [0, 0], sizes = [8, 8], strides = [1, 1]} : vector<8x96xbf16> to vector<8x8xbf16>
    %6 = vector.extract_strided_slice %4 {offsets = [0, 32], sizes = [8, 8], strides = [1, 1]} : vector<8x96xbf16> to vector<8x8xbf16>
    %7 = vector.extract_strided_slice %4 {offsets = [0, 64], sizes = [8, 8], strides = [1, 1]} : vector<8x96xbf16> to vector<8x8xbf16>
    %cst_4 = arith.constant dense<0.000000e+00> : vector<8x8xf32>
    %8 = tpu.matmul %5, %6, %cst_4 {dimension_numbers = #tpu.dot_dimension_numbers<[1], [1], [0], [0], [0, 0, 1, 0], [], []>} : vector<8x8xbf16>, vector<8x8xbf16>, vector<8x8xf32> -> vector<8x8xf32>
    %cst_5 = arith.constant 0.353553385 : f32
    %9 = vector.broadcast %cst_5 : f32 to vector<8x8xf32>
    %10 = arith.mulf %8, %9 : vector<8x8xf32>
    %cst_6 = arith.constant dense<0xFF800000> : vector<8xf32>
    %11 = vector.multi_reduction <maximumf>, %10, %cst_6 [1] : vector<8x8xf32> to vector<8xf32>
    %12 = vector.shape_cast %11 : vector<8xf32> to vector<8x1xf32>
    %13 = vector.broadcast %12 : vector<8x1xf32> to vector<8x8xf32>
    %14 = arith.subf %10, %13 : vector<8x8xf32>
    %15 = math.exp %14 : vector<8x8xf32>
    %cst_7 = arith.constant dense<0.000000e+00> : vector<8xf32>
    %16 = vector.multi_reduction <add>, %15, %cst_7 [1] : vector<8x8xf32> to vector<8xf32>
    %17 = vector.shape_cast %16 : vector<8xf32> to vector<8x1xf32>
    %18 = tpu.reciprocal %17 {approx = true} : vector<8x1xf32> -> vector<8x1xf32>
    %19 = vector.broadcast %18 : vector<8x1xf32> to vector<8x8xf32>
    %20 = arith.mulf %15, %19 : vector<8x8xf32>
    %21 = arith.truncf %20 : vector<8x8xf32> to vector<8x8xbf16>
    %cst_8 = arith.constant dense<0.000000e+00> : vector<8x8xf32>
    %22 = tpu.matmul %21, %7, %cst_8 {dimension_numbers = #tpu.dot_dimension_numbers<[1], [0], [0], [1], [0, 0, 1, 1], [], []>} : vector<8x8xbf16>, vector<8x8xbf16>, vector<8x8xf32> -> vector<8x8xf32>
    %c0_9 = arith.constant 0 : index
    %c0_10 = arith.constant 0 : index
    %23 = vector.load %arg5[%c0_9, %c0_10] : memref<8x32xf32, #tpu.memory_space<vmem>>, vector<8x8xf32>
    tpu.vector_store %arg5[%c0_9, %c0_10], %22 {strides = array<i32>} : memref<8x32xf32, #tpu.memory_space<vmem>>, vector<8x8xf32>,
    %24 = vector.extract_strided_slice %4 {offsets = [0, 8], sizes = [8, 8], strides = [1, 1]} : vector<8x96xbf16> to vector<8x8xbf16>
    %25 = vector.extract_strided_slice %4 {offsets = [0, 40], sizes = [8, 8], strides = [1, 1]} : vector<8x96xbf16> to vector<8x8xbf16>
    %26 = vector.extract_strided_slice %4 {offsets = [0, 72], sizes = [8, 8], strides = [1, 1]} : vector<8x96xbf16> to vector<8x8xbf16>
    %cst_11 = arith.constant dense<0.000000e+00> : vector<8x8xf32>
    %27 = tpu.matmul %24, %25, %cst_11 {dimension_numbers = #tpu.dot_dimension_numbers<[1], [1], [0], [0], [0, 0, 1, 0], [], []>} : vector<8x8xbf16>, vector<8x8xbf16>, vector<8x8xf32> -> vector<8x8xf32>
    %cst_12 = arith.constant 0.353553385 : f32
    %28 = vector.broadcast %cst_12 : f32 to vector<8x8xf32>
    %29 = arith.mulf %27, %28 : vector<8x8xf32>
    %cst_13 = arith.constant dense<0xFF800000> : vector<8xf32>
    %30 = vector.multi_reduction <maximumf>, %29, %cst_13 [1] : vector<8x8xf32> to vector<8xf32>
    %31 = vector.shape_cast %30 : vector<8xf32> to vector<8x1xf32>
    %32 = vector.broadcast %31 : vector<8x1xf32> to vector<8x8xf32>
    %33 = arith.subf %29, %32 : vector<8x8xf32>
    %34 = math.exp %33 : vector<8x8xf32>
    %cst_14 = arith.constant dense<0.000000e+00> : vector<8xf32>
    %35 = vector.multi_reduction <add>, %34, %cst_14 [1] : vector<8x8xf32> to vector<8xf32>
    %36 = vector.shape_cast %35 : vector<8xf32> to vector<8x1xf32>
    %37 = tpu.reciprocal %36 {approx = true} : vector<8x1xf32> -> vector<8x1xf32>
    %38 = vector.broadcast %37 : vector<8x1xf32> to vector<8x8xf32>
    %39 = arith.mulf %34, %38 : vector<8x8xf32>
    %40 = arith.truncf %39 : vector<8x8xf32> to vector<8x8xbf16>
    %cst_15 = arith.constant dense<0.000000e+00> : vector<8x8xf32>
    %41 = tpu.matmul %40, %26, %cst_15 {dimension_numbers = #tpu.dot_dimension_numbers<[1], [0], [0], [1], [0, 0, 1, 1], [], []>} : vector<8x8xbf16>, vector<8x8xbf16>, vector<8x8xf32> -> vector<8x8xf32>
    %c0_16 = arith.constant 0 : index
    %c8 = arith.constant 8 : index
    %42 = vector.load %arg5[%c0_16, %c8] : memref<8x32xf32, #tpu.memory_space<vmem>>, vector<8x8xf32>
    tpu.vector_store %arg5[%c0_16, %c8], %41 {strides = array<i32>} : memref<8x32xf32, #tpu.memory_space<vmem>>, vector<8x8xf32>,
    %43 = vector.extract_strided_slice %4 {offsets = [0, 16], sizes = [8, 8], strides = [1, 1]} : vector<8x96xbf16> to vector<8x8xbf16>
    %44 = vector.extract_strided_slice %4 {offsets = [0, 48], sizes = [8, 8], strides = [1, 1]} : vector<8x96xbf16> to vector<8x8xbf16>
    %45 = vector.extract_strided_slice %4 {offsets = [0, 80], sizes = [8, 8], strides = [1, 1]} : vector<8x96xbf16> to vector<8x8xbf16>
    %cst_17 = arith.constant dense<0.000000e+00> : vector<8x8xf32>
    %46 = tpu.matmul %43, %44, %cst_17 {dimension_numbers = #tpu.dot_dimension_numbers<[1], [1], [0], [0], [0, 0, 1, 0], [], []>} : vector<8x8xbf16>, vector<8x8xbf16>, vector<8x8xf32> -> vector<8x8xf32>
    %cst_18 = arith.constant 0.353553385 : f32
    %47 = vector.broadcast %cst_18 : f32 to vector<8x8xf32>
    %48 = arith.mulf %46, %47 : vector<8x8xf32>
    %cst_19 = arith.constant dense<0xFF800000> : vector<8xf32>
    %49 = vector.multi_reduction <maximumf>, %48, %cst_19 [1] : vector<8x8xf32> to vector<8xf32>
    %50 = vector.shape_cast %49 : vector<8xf32> to vector<8x1xf32>
    %51 = vector.broadcast %50 : vector<8x1xf32> to vector<8x8xf32>
    %52 = arith.subf %48, %51 : vector<8x8xf32>
    %53 = math.exp %52 : vector<8x8xf32>
    %cst_20 = arith.constant dense<0.000000e+00> : vector<8xf32>
    %54 = vector.multi_reduction <add>, %53, %cst_20 [1] : vector<8x8xf32> to vector<8xf32>
    %55 = vector.shape_cast %54 : vector<8xf32> to vector<8x1xf32>
    %56 = tpu.reciprocal %55 {approx = true} : vector<8x1xf32> -> vector<8x1xf32>
    %57 = vector.broadcast %56 : vector<8x1xf32> to vector<8x8xf32>
    %58 = arith.mulf %53, %57 : vector<8x8xf32>
    %59 = arith.truncf %58 : vector<8x8xf32> to vector<8x8xbf16>
    %cst_21 = arith.constant dense<0.000000e+00> : vector<8x8xf32>
    %60 = tpu.matmul %59, %45, %cst_21 {dimension_numbers = #tpu.dot_dimension_numbers<[1], [0], [0], [1], [0, 0, 1, 1], [], []>} : vector<8x8xbf16>, vector<8x8xbf16>, vector<8x8xf32> -> vector<8x8xf32>
    %c0_22 = arith.constant 0 : index
    %c16 = arith.constant 16 : index
    %61 = vector.load %arg5[%c0_22, %c16] : memref<8x32xf32, #tpu.memory_space<vmem>>, vector<8x8xf32>
    tpu.vector_store %arg5[%c0_22, %c16], %60 {strides = array<i32>} : memref<8x32xf32, #tpu.memory_space<vmem>>, vector<8x8xf32>,
    %62 = vector.extract_strided_slice %4 {offsets = [0, 24], sizes = [8, 8], strides = [1, 1]} : vector<8x96xbf16> to vector<8x8xbf16>
    %63 = vector.extract_strided_slice %4 {offsets = [0, 56], sizes = [8, 8], strides = [1, 1]} : vector<8x96xbf16> to vector<8x8xbf16>
    %64 = vector.extract_strided_slice %4 {offsets = [0, 88], sizes = [8, 8], strides = [1, 1]} : vector<8x96xbf16> to vector<8x8xbf16>
    %cst_23 = arith.constant dense<0.000000e+00> : vector<8x8xf32>
    %65 = tpu.matmul %62, %63, %cst_23 {dimension_numbers = #tpu.dot_dimension_numbers<[1], [1], [0], [0], [0, 0, 1, 0], [], []>} : vector<8x8xbf16>, vector<8x8xbf16>, vector<8x8xf32> -> vector<8x8xf32>
    %cst_24 = arith.constant 0.353553385 : f32
    %66 = vector.broadcast %cst_24 : f32 to vector<8x8xf32>
    %67 = arith.mulf %65, %66 : vector<8x8xf32>
    %cst_25 = arith.constant dense<0xFF800000> : vector<8xf32>
    %68 = vector.multi_reduction <maximumf>, %67, %cst_25 [1] : vector<8x8xf32> to vector<8xf32>
    %69 = vector.shape_cast %68 : vector<8xf32> to vector<8x1xf32>
    %70 = vector.broadcast %69 : vector<8x1xf32> to vector<8x8xf32>
    %71 = arith.subf %67, %70 : vector<8x8xf32>
    %72 = math.exp %71 : vector<8x8xf32>
    %cst_26 = arith.constant dense<0.000000e+00> : vector<8xf32>
    %73 = vector.multi_reduction <add>, %72, %cst_26 [1] : vector<8x8xf32> to vector<8xf32>
    %74 = vector.shape_cast %73 : vector<8xf32> to vector<8x1xf32>
    %75 = tpu.reciprocal %74 {approx = true} : vector<8x1xf32> -> vector<8x1xf32>
    %76 = vector.broadcast %75 : vector<8x1xf32> to vector<8x8xf32>
    %77 = arith.mulf %72, %76 : vector<8x8xf32>
    %78 = arith.truncf %77 : vector<8x8xf32> to vector<8x8xbf16>
    %cst_27 = arith.constant dense<0.000000e+00> : vector<8x8xf32>
    %79 = tpu.matmul %78, %64, %cst_27 {dimension_numbers = #tpu.dot_dimension_numbers<[1], [0], [0], [1], [0, 0, 1, 1], [], []>} : vector<8x8xbf16>, vector<8x8xbf16>, vector<8x8xf32> -> vector<8x8xf32>
    %c0_28 = arith.constant 0 : index
    %c24 = arith.constant 24 : index
    %80 = vector.load %arg5[%c0_28, %c24] : memref<8x32xf32, #tpu.memory_space<vmem>>, vector<8x8xf32>
    tpu.vector_store %arg5[%c0_28, %c24], %79 {strides = array<i32>} : memref<8x32xf32, #tpu.memory_space<vmem>>, vector<8x8xf32>,
    %c0_29 = arith.constant 0 : index
    %c0_30 = arith.constant 0 : index
    %81 = vector.load %arg5[%c0_29, %c0_30] : memref<8x32xf32, #tpu.memory_space<vmem>>, vector<8x32xf32>
    %82 = arith.truncf %81 : vector<8x32xf32> to vector<8x32xbf16>
    %c0_31 = arith.constant 0 : index
    %c0_32 = arith.constant 0 : index
    %83 = vector.load %arg3[%c0_31, %c0_32] : memref<32x32xbf16, #tpu.memory_space<vmem>>, vector<32x32xbf16>
    %cst_33 = arith.constant dense<0.000000e+00> : vector<8x32xf32>
    %84 = tpu.matmul %82, %83, %cst_33 {dimension_numbers = #tpu.dot_dimension_numbers<[1], [0], [0], [1], [0, 0, 1, 1], [], []>} : vector<8x32xbf16>, vector<32x32xbf16>, vector<8x32xf32> -> vector<8x32xf32>
    %c0_34 = arith.constant 0 : index
    %c0_35 = arith.constant 0 : index
    %c0_36 = arith.constant 0 : index
    %85 = vector.load %arg4[%c0_34, %c0_35, %c0_36] : memref<1x8x32xf32, #tpu.memory_space<vmem>>, vector<1x8x32xf32>
    %86 = vector.shape_cast %85 : vector<1x8x32xf32> to vector<8x32xf32>
    %87 = vector.shape_cast %84 : vector<8x32xf32> to vector<1x8x32xf32>
    tpu.vector_store %arg4[%c0_34, %c0_35, %c0_36], %87 {strides = array<i32>} : memref<1x8x32xf32, #tpu.memory_space<vmem>>, vector<1x8x32xf32>,
    return
  }
  func.func @transform_0(%arg0: i32) -> (i32, i32, i32) {
    %c0_i32 = arith.constant 0 : i32
    %c0_i32_0 = arith.constant 0 : i32
    %c0_i32_1 = arith.constant 0 : i32
    return %arg0, %c0_i32, %c0_i32_0 : i32, i32, i32
  }
  func.func @transform_1(%arg0: i32) -> (i32, i32) {
    %c0_i32 = arith.constant 0 : i32
    %c0_i32_0 = arith.constant 0 : i32
    %c0_i32_1 = arith.constant 0 : i32
    return %c0_i32, %c0_i32_0 : i32, i32
  }
  func.func @transform_2(%arg0: i32) -> (i32, i32) {
    %c0_i32 = arith.constant 0 : i32
    %c0_i32_0 = arith.constant 0 : i32
    %c0_i32_1 = arith.constant 0 : i32
    return %c0_i32, %c0_i32_0 : i32, i32
  }
  func.func @transform_3(%arg0: i32) -> (i32, i32, i32) {
    %c0_i32 = arith.constant 0 : i32
    %c0_i32_0 = arith.constant 0 : i32
    %c0_i32_1 = arith.constant 0 : i32
    return %arg0, %c0_i32, %c0_i32_0 : i32, i32, i32
  }
}

</mosaic_0001>

<bundles_post_ra>
// kernel: tpu_custom_call.1
= control target key start
LH: loop header
LB: loop body
LE: loop exit
PB: predicated region body
PF: predicated region fallthrough
CT: control target
= control target key end

     0   :  { %8 = vsyncpa [#allocation4], 0  ;;  %s1179_s0 = inlined_call_operand.hbm [shape: bf16[2,8,32], index: 0, kind: input, shape index: {}]   ;;  %s1180_s1 = inlined_call_operand.hbm [shape: bf16[32,96], index: 1, kind: input, shape index: {}]   ;;  %s1181_s2 = inlined_call_operand.hbm [shape: bf16[32,32], index: 2, kind: input, shape index: {}]   ;;  %s1182_s3 = inlined_call_operand.hbm [shape: f32[2,8,32], index: 3, kind: output, shape index: {}]  }
   0x1   :  { %10 = vsyncpa [#allocation4 + $0x1], 0 }
   0x2   :  { %11 = vsyncpa [#allocation7], 0 }
   0x3   :  { %12 = vsyncpa [#allocation5], 0 }
   0x4   :  { %14 = vsyncpa [#allocation5 + $0x1], 0  ;;  %s992_s12 = smov 0   ;;  %s994_s13 = smov 0  }
   0x5   :  { %s996_s14 = smov 0   ;;  %s998_s15 = smov 0  }
   0x6 LB: > { %s130_s18 = sshll.u32 %s1180_s1, 4  ;;  %s1016_s19 = sadd.s32 4294967295, %s952_s15   ;;  %s952_s15 = sphi %s998_s15, %s1193_s15   ;;  %s948_s14 = sphi %s996_s14, %s1192_s14   ;;  %s944_s13 = sphi %s994_s13, %s1191_s13   ;;  %s940_s12 = sphi %s992_s12, %s1190_s12   ;;  %s131_s18 = int_to_ptr.hbm [resolvable:$true] %s130_s18 }
   0x7   : > { %p648_p0 = scmp.ge.s32.totalorder %s952_s15, 1  ;;  %p41_p1 = scmp.eq.s32.totalorder %s1016_s19, 0 }
   0x8   : > { %p119_p2 = scmp.lt.s32.totalorder %s952_s15, 3  ;;  %s954_s21 = smov [#allocation6]  }
   0x9   : > { %s132_s22 = sshll.u32 %s954_s21, 4  ;;  %s144_s25 = sshll.u32 %s1181_s2, 4  ;;  %s133_s22 = int_to_ptr.vmem [resolvable:$true] %s132_s22  ;;  %s145_s25 = int_to_ptr.hbm [resolvable:$true] %s144_s25 }
   0xa   : > { %p1021_p3 = pnand %p648_p0, %p119_p2  ;;  %s955_s26 = smov [#allocation8]  }
   0xb   : > { %s146_s27 = sshll.u32 %s955_s26, 4  ;;  %s956_s28 = smov 64   ;;  %s147_s27 = int_to_ptr.vmem [resolvable:$true] %s146_s27 }
   0xc   : > { %p705_p4 = pneg %p1021_p3  ;;  %s957_s29 = smov 4  }
   0xd   : > { %s647_s30 = sadd.s32 4294967294, %s952_s15   ;;  %s1035_s4 = sadd.s32 1, %s952_s15  }
   0xe   : > { %p706_p6 = pnand %p705_p4, %p41_p1  ;;  %s24_s5 = ssub.s32 %s952_s15, %s1035_s4 }
   0xf   : > { %s27_s6 = sadd.s32 1, %s948_s14  ;;  %p25_p7 = scmp.eq.s32.totalorder %s24_s5, 0 }
  0x10   : > { %708 = dma.hbm_to_vmem [thread:$0]  (!%p706_p6), %s131_s18, 256, %s133_s22, [#allocation7], %s956_s28, %s956_s28, %s957_s29  }
  0x11   : > { %711 = dma.hbm_to_vmem [thread:$0]  (!%p706_p6), %s145_s25, 256, %s147_s27, [#allocation7], %s956_s28, %s956_s28, %s957_s29  }
  0x12   : > { %p34_p8 = scmp.ne.s32.totalorder %s948_s14, %s944_s13  ;;  %p35_p9 = scmp.eq.s32.totalorder %s952_s15, 0 }
  0x13   : > { %p40_p10 = scmp.ne.s32.totalorder %s944_s13, %s940_s12  ;;  %p106_p13 = scmp.eq.s32.totalorder %s1016_s19, 1 }
  0x14   : > { %s1046_s7 = scalar_select %p25_p7, %s948_s14, %s27_s6  }
  0x15   : > { %p1048_p11 = por %p35_p9, %p34_p8  ;;  %p1054_p12 = por %p41_p1, %p40_p10 }
  0x16   : > { %p112_p0 = scmp.eq.s32.totalorder %s647_s30, 1  ;;  %p722_p2 = scmp.lt.s32.totalorder %s952_s15, 2 }
  0x17   : > { %s160_s10 = sand.u32 1, %s948_s14   ;;  %p1061_p4 = por %p106_p13, %p34_p8 }
  0x18   : > { %p1065_p6 = por %p112_p0, %p40_p10  ;;  %s652_s17 = sshll.u32 %s160_s10, 2 }
  0x19   : > { %s653_s18 = sshll.u32 %s952_s15, 2  ;;  %s164_s24 = scalar_lea.vmem [#allocation3], %s652_s17 }
  0x1a   : > { %s168_s23 = scalar_lea.hbm %s1179_s0, %s653_s18  ;;  %s172_s25 = sshll.u32 %s164_s24, 4  ;;  %s173_s25 = int_to_ptr.vmem [resolvable:$true] %s172_s25 }
  0x1b   : > { %s170_s26 = sshll.u32 %s168_s23, 4  ;;  %p1075_p7 = pnand %p722_p2, %p1048_p11  ;;  %s171_s26 = int_to_ptr.hbm [resolvable:$true] %s170_s26 }
  0x1c   : > { %s161_s28 = scalar_lea.sflag [#allocation4], %s160_s10  ;;  %s852_s29 = sshra.s32 %s171_s26, 4  ;;  %s853_s29 = int_to_ptr.hbm [resolvable:$true] %s852_s29 }
  0x1d   : > { %s854_s30 = scalar_lea.hbm %s853_s29, 4  ;;  %p856_p9 = pneg %p1075_p7 }
  0x1e   : > { %p855_p8 = scmp.ne.s32.totalorder %s853_s29, %s854_s30  ;;  %s859_s17 = scalar_lea.hbm %s1179_s0, 8 }
  0x1f   : > { %p860_p11 = scmp.lt.s32.totalorder %s853_s29, %s1179_s0  ;;  %p861_p0 = scmp.lt.s32.totalorder %s859_s17, %s854_s30 }
  0x20   : > { %p857_p10 = pnand %p856_p9, %p855_p8 }
  0x21   : > { %p862_p2 = por %p861_p0, %p860_p11 }
  0x22   : > { %p858_p13 = pneg %p857_p10 }
  0x24   : > { %p863_p5 = pnand %p862_p2, %p858_p13 }
  0x26   : > { %866 = shalt.err (!%p863_p5)
}
  0x27   : > { %715 = dma.hbm_to_vmem [thread:$0]  (!%p1075_p7), %s171_s26, 64, %s173_s25, %s161_s28  }
  0x28   : > { %181 = sbr.rel (%p1021_p3) target bundleno = 1133 (0x46d), region = 32  ;;  %s1092_s10 = sand.u32 (!%p1021_p3), 1, %s944_s13  }
  0x29   : > { %s655_s21 = sshll.u32 (!%p1021_p3), %s1092_s10, 2  ;;  %s184_s22 = scalar_lea.sflag (!%p1021_p3), [#allocation4], %s1092_s10 }
  0x2a   : > { %s187_s23 = scalar_lea.vmem (!%p1021_p3), [#allocation3], %s655_s21 }
  0x2d   : > { %927 = dma.done.wait (%p1054_p12), %s184_s22, 64  }
  0x2e   : > { %929 = vsyncadd (%p1054_p12), %s184_s22, 4294967232 }
  0x2f   : > { %931 = dma.done.wait (%p41_p1), [#allocation7], 512  }
  0x30   : > { %933 = vsyncadd (%p41_p1), [#allocation7], 4294966784  ;;  %v690_v0 = vld [vmem:[#allocation6 + $0x8] sm:$0xff]  ;;  %v689_v1 = vld [vmem:[#allocation6] sm:$0xff]  ;;  %vm239_vm0 = vcmask 261120   ;;  %s958_s20 = smov 104  }
  0x31   : > { %249 = vmatpush.bf16.msra.mxu0 %v690_v0  ;;  %v222_v2 = vld [vmem:[%s187_s23] sm:$0xf]  ;;  %s959_s9 = smov 120   ;;  %s960_s24 = smov 96   ;;  %vm262_vm1 = vcmask 64512   ;;  %vm300_vm2 = vcmask 1043456  }
  0x32   : > { %s961_s25 = smov 80   ;;  %s962_s26 = smov 72   ;;  %vm379_vm3 = vcmask 130112   ;;  %vm442_vm4 = vcmask 195712   ;;  %vm505_vm5 = vcmask 261312  }
  0x33   : > { %s963_s27 = smov 88   ;;  %s964_s28 = smov 112  }
  0x34   : > { %s965_s29 = smov 64   ;;  %s966_s30 = smov 40  }
  0x35   : > { %250 = vmatpush.bf16.msra.mxu0 %v689_v1  ;;  %s967_s5 = smov 56   ;;  %s968_s6 = smov 48  }
  0x36   : > { %s969_s17 = smov 8   ;;  %s970_s18 = smov 16  }
  0x37   : > { %s971_s8 = smov 24   ;;  %s686_s21 = sshll.u32 %s1016_s19, 3 }
  0x38   : > { %667 = vmatmul.msk.bf16.vlgmr.msra.gmra.mxu0 %vm239_vm0, %v222_v2  ;;  %s658_s22 = sshll.u32 %s1092_s10, 3 }
  0xb5   : > { %v252_v3 = vpop.f32.mrf.mxu0 }
  0xb6   : > { %v256_v4 = vpack.c.bf16 %v252_v3, %v252_v3 }
  0xb8   : > { %v258_v5 = vunpack.c.l.b16 %v256_v4 }
  0xba   : > { %v1105_v6 = vpack.c.b16 %v258_v5, %v258_v5 }
  0xbc   : > { %444 = vrot.lane.b32.xlu2 %v1105_v6, %s958_s20  ;;  %318 = vrot.lane.b32.xlu1 %v1105_v6, %s959_s9  ;;  %s553_s9 = scalar_lea.hbm %s1182_s3, %s686_s21 }
  0xbd   : > { %260 = vrot.lane.b32.xlu0 %v1105_v6, %s960_s24  ;;  %v254_v7 = vpop.f32.mrf.mxu0  ;;  %s220_s24 = scalar_lea.vmem [#allocation9], %s658_s22 }
  0xc4   : > { %383 = vrot.lane.b32.xlu2 %v1105_v6, %s961_s25  ;;  %446 = vrot.lane.b32.xlu1 %v1105_v6, %s962_s26  ;;  %s555_s25 = sshll.u32 %s220_s24, 4  ;;  %s557_s26 = sshll.u32 %s553_s9, 4  ;;  %s556_s25 = int_to_ptr.vmem [resolvable:$true] %s555_s25  ;;  %s558_s26 = int_to_ptr.hbm [resolvable:$true] %s557_s26 }
  0xc5   : > { %320 = vrot.lane.b32.xlu0 %v1105_v6, %s963_s27  ;;  %s543_s27 = scalar_lea.sflag [#allocation5], %s1092_s10 }
  0xcd   : > { %381 = vrot.lane.b32.xlu0 %v1105_v6, %s964_s28  ;;  %s896_s28 = sshra.s32 %s558_s26, 4  ;;  %s897_s28 = int_to_ptr.hbm [resolvable:$true] %s896_s28 }
  0xce   : > { %p903_p12 = scmp.lt.s32.totalorder %s897_s28, %s1182_s3 }
 0x116   : > { %v445_v8 = vpop.permute.xlu2 %444 }
 0x11e   : > { %v384_v9 = vpop.permute.xlu2 %383 }
 0x11f   : > { %v389_v10 = vsel %vm262_vm1, %v384_v9, 0 }
 0x120   : > { %398 = vmatpush.bf16.xpose.msrb.mxu0 %v389_v10 }
 0x12e   : > { %v319_v11 = vpop.permute.xlu1 %318 }
 0x12f   : > { %v261_v12 = vpop.permute.xlu0 %260 }
 0x130   : > { %v267_v13 = vsel %vm262_vm1, %v261_v12, 0 }
 0x131   : > { %276 = vmatpush.bf16.xpose.msra.mxu1 %v267_v13 }
 0x136   : > { %v447_v14 = vpop.permute.xlu1 %446 }
 0x137   : > { %v321_v15 = vpop.permute.xlu0 %320  ;;  %v452_v16 = vsel %vm262_vm1, %v447_v14, 0 }
 0x138   : > { %668 = vmatmul.msk.bf16.vlgmr.msra.gmra.mxu1 %vm262_vm1, %v256_v4  ;;  %v326_v17 = vsel %vm262_vm1, %v321_v15, 0 }
 0x139   : > { %335 = vmatpush.bf16.xpose.msra.mxu3 %v326_v17 }
 0x13f   : > { %v382_v18 = vpop.permute.xlu0 %381 }
 0x140   : > { %670 = vmatmul.msk.bf16.vlgmr.msra.gmra.mxu3 %vm262_vm1, %v319_v11  ;;  %672 = vmatmul.msk.bf16.vlgmr.msrb.gmra.mxu0 %vm262_vm1, %v382_v18 }
 0x141   : > { %461 = vmatpush.bf16.xpose.msrb.mxu3 %v452_v16 }
 0x150   : > { %674 = vmatmul.msk.bf16.vlgmr.msrb.gmra.mxu3 %vm262_vm1, %v445_v8 }
 0x1b5   : > { %v278_v19 = vpop.f32.mrf.mxu1 }
 0x1b6   : > { %v282_v20 = vmul.f32 0.35355338, %v278_v19 }
 0x1b8   : > { %v283_v21 = vsel %vm262_vm1, %v282_v20, -inf }
 0x1b9   : > { %284 = vmax.xlane.f32.xlu1 %v283_v21 }
 0x1bd   : > { %v280_v22 = vpop.f32.mrf.mxu1  ;;  %v400_v23 = vpop.f32.mrf.mxu0 }
 0x1be   : > { %v404_v28 = vmul.f32 0.35355338, %v400_v23  ;;  %v692_v23 = vld [vmem:[#allocation8 + $0x8] sm:$0xff] }
 0x1bf   : > { %534 = vmatpush.bf16.msra.mxu0 %v692_v23 }
 0x1c0   : > { %v405_v30 = vsel %vm262_vm1, %v404_v28, -inf }
 0x1c3   : > { %v337_v24 = vpop.f32.mrf.mxu3 }
 0x1c4   : > { %v341_v25 = vmul.f32 0.35355338, %v337_v24  ;;  %v691_v24 = vld [vmem:[#allocation8] sm:$0xff] }
 0x1c5   : > { %v402_v26 = vpop.f32.mrf.mxu0  ;;  %535 = vmatpush.bf16.msra.mxu0 %v691_v24 }
 0x1c6   : > { %v342_v27 = vsel %vm262_vm1, %v341_v25, -inf }
 0x1c7   : > { %343 = vmax.xlane.f32.xlu2 %v342_v27 }
 0x1cb   : > { %v339_v29 = vpop.f32.mrf.mxu3 }
 0x1cf   : > { %406 = vmax.xlane.f32.xlu2 %v405_v30 }
 0x1d3   : > { %v463_v31 = vpop.f32.mrf.mxu3 }
 0x1d4   : > { %v467_v32 = vmul.f32 0.35355338, %v463_v31 }
 0x1d6   : > { %v468_v33 = vsel %vm262_vm1, %v467_v32, -inf }
 0x1d7   : > { %469 = vmax.xlane.f32.xlu0 %v468_v33 }
 0x1db   : > { %v465_v34 = vpop.f32.mrf.mxu3 }
 0x1e7   : > { %295 = vrot.lane.b32.xlu2 %v1105_v6, %s965_s29  ;;  %s898_s29 = scalar_lea.hbm %s897_s28, 8 }
 0x1e8   : > { %p899_p1 = scmp.ne.s32.totalorder %s897_s28, %s898_s29 }
 0x1ea   : > { %p900_p3 = pnand %p899_p1, %p1061_p4 }
 0x1ec   : > { %p901_p5 = pneg %p900_p3 }
 0x1ef   : > { %480 = vrot.lane.b32.xlu2 %v1105_v6, %s966_s30 }
 0x22c   : > { %v285_v35 = vpop.xlane.xlu1 %284 }
 0x22d   : > { %v286_v36 = vsub.f32 %v282_v20, %v285_v35 }
 0x22f   : > { %v287_v37 = vmul.f32 1.442695, %v286_v36 }
 0x231   : > { %776 = vpow2.f32 %v287_v37 }
 0x237   : > { %v777_v38 = vpop.eup %776 }
 0x238   : > { %v289_v39 = vsel %vm262_vm1, %v777_v38, 0.0 }
 0x239   : > { %290 = vadd.xlane.f32.xlu1 %v289_v39 }
 0x23a   : > { %v344_v40 = vpop.xlane.xlu2 %343 }
 0x23b   : > { %v345_v43 = vsub.f32 %v341_v25, %v344_v40 }
 0x23d   : > { %v346_v45 = vmul.f32 1.442695, %v345_v43 }
 0x242   : > { %v407_v41 = vpop.xlane.xlu2 %406 }
 0x243   : > { %v408_v42 = vsub.f32 %v404_v28, %v407_v41 }
 0x245   : > { %v409_v44 = vmul.f32 1.442695, %v408_v42 }
 0x247   : > { %778 = vpow2.f32 %v409_v44 }
 0x248   : > { %780 = vpow2.f32 %v346_v45 }
 0x24a   : > { %v470_v46 = vpop.xlane.xlu0 %469  ;;  %v296_v47 = vpop.permute.xlu2 %295 }
 0x24b   : > { %v302_v48 = vsel %vm300_vm2, %v296_v47, 0  ;;  %v471_v50 = vsub.f32 %v467_v32, %v470_v46 }
 0x24c   : > { %311 = vmatpush.bf16.msra.mxu2 %v302_v48 }
 0x24d   : > { %v779_v49 = vpop.eup %778  ;;  %v472_v52 = vmul.f32 1.442695, %v471_v50 }
 0x24e   : > { %v411_v51 = vsel %vm262_vm1, %v779_v49, 0.0  ;;  %v781_v53 = vpop.eup %780 }
 0x24f   : > { %412 = vadd.xlane.f32.xlu0 %v411_v51  ;;  %782 = vpow2.f32 %v472_v52  ;;  %v348_v54 = vsel %vm262_vm1, %v781_v53, 0.0 }
 0x252   : > { %354 = vrot.lane.b32.xlu1 %v1105_v6, %s967_s5  ;;  %v481_v62 = vpop.permute.xlu2 %480  ;;  %s902_s5 = scalar_lea.hbm %s1182_s3, 16 }
 0x253   : > { %v486_v1 = vsel %vm300_vm2, %v481_v62, 0  ;;  %p904_p7 = scmp.lt.s32.totalorder %s902_s5, %s898_s29 }
 0x255   : > { %v783_v55 = vpop.eup %782  ;;  %p905_p8 = por %p904_p7, %p903_p12 }
 0x256   : > { %v474_v56 = vsel %vm262_vm1, %v783_v55, 0.0 }
 0x257   : > { %349 = vadd.xlane.f32.xlu0 %v348_v54  ;;  %p906_p9 = pnand %p905_p8, %p901_p5 }
 0x25f   : > { %475 = vadd.xlane.f32.xlu0 %v474_v56 }
 0x273   : > { %417 = vrot.lane.b32.xlu0 %v1105_v6, %s968_s6 }
 0x2ac   : > { %v291_v57 = vpop.xlane.xlu1 %290 }
 0x2ad   : > { %784 = vrcp.f32 %v291_v57 }
 0x2b3   : > { %v785_v58 = vpop.eup %784 }
 0x2b4   : > { %v293_v59 = vmul.f32 %v785_v58, %v777_v38 }
 0x2b6   : > { %v294_v60 = vpack.c.bf16 %v293_v59, %v293_v59 }
 0x2b8   : > { %669 = vmatmul.msk.bf16.vlgmr.msra.gmra.mxu2 %vm262_vm1, %v294_v60 }
 0x2c2   : > { %v413_v61 = vpop.xlane.xlu0 %412 }
 0x2c4   : > { %v355_v63 = vpop.permute.xlu1 %354 }
 0x2c5   : > { %v360_v0 = vsel %vm300_vm2, %v355_v63, 0 }
 0x2c6   : > { %369 = vmatpush.bf16.msrb.mxu2 %v360_v0 }
 0x2ca   : > { %495 = vmatpush.bf16.msra.mxu2 %v486_v1  ;;  %v350_v2 = vpop.xlane.xlu0 %349 }
 0x2cb   : > { %786 = vrcp.f32 %v350_v2 }
 0x2d1   : > { %v787_v3 = vpop.eup %786 }
 0x2d2   : > { %v352_v4 = vmul.f32 %v787_v3, %v781_v53  ;;  %v476_v5 = vpop.xlane.xlu0 %475 }
 0x2d3   : > { %788 = vrcp.f32 %v476_v5 }
 0x2d4   : > { %v353_v6 = vpack.c.bf16 %v352_v4, %v352_v4  ;;  %790 = vrcp.f32 %v413_v61 }
 0x2d6   : > { %671 = vmatmul.msk.bf16.vlgmr.msrb.gmra.mxu2 %vm262_vm1, %v353_v6 }
 0x2d9   : > { %v789_v7 = vpop.eup %788 }
 0x2da   : > { %v478_v8 = vmul.f32 %v789_v7, %v783_v55  ;;  %v791_v9 = vpop.eup %790 }
 0x2db   : > { %v415_v10 = vmul.f32 %v791_v9, %v779_v49 }
 0x2dc   : > { %v479_v11 = vpack.c.bf16 %v478_v8, %v478_v8 }
 0x2dd   : > { %v416_v14 = vpack.c.bf16 %v415_v10, %v415_v10 }
 0x2e5   : > { %v418_v12 = vpop.permute.xlu0 %417 }
 0x2e6   : > { %675 = vmatmul.msk.bf16.vlgmr.msra.gmra.mxu2 %vm262_vm1, %v479_v11  ;;  %v423_v13 = vsel %vm300_vm2, %v418_v12, 0 }
 0x2e7   : > { %432 = vmatpush.bf16.msrb.mxu1 %v423_v13 }
 0x2ea   : > { %673 = vmatmul.msk.bf16.vlgmr.msrb.gmra.mxu1 %vm262_vm1, %v416_v14 }
 0x33b   : > { %v313_v15 = vpop.f32.mrf.mxu2 }
 0x33c   : > { %317 = vst.msk [vmem:[#allocation2] sm:$0xff] %vm262_vm1, %v313_v15 }
 0x343   : > { %v315_v16 = vpop.f32.mrf.mxu2 }
 0x359   : > { %v371_v17 = vpop.f32.mrf.mxu2 }
 0x35a   : > { %376 = vrot.lane.b32.xlu1 %v371_v17, %s969_s17 }
 0x361   : > { %v373_v18 = vpop.f32.mrf.mxu2 }
 0x367   : > { %v434_v19 = vpop.f32.mrf.mxu1 }
 0x368   : > { %439 = vrot.lane.b32.xlu2 %v434_v19, %s970_s18 }
 0x369   : > { %v497_v20 = vpop.f32.mrf.mxu2 }
 0x36a   : > { %502 = vrot.lane.b32.xlu1 %v497_v20, %s971_s8 }
 0x36f   : > { %v436_v21 = vpop.f32.mrf.mxu1 }
 0x371   : > { %v499_v22 = vpop.f32.mrf.mxu2 }
 0x3c2   : > { %v440_v26 = vpop.permute.xlu2 %439 }
 0x3cc   : > { %v377_v25 = vpop.permute.xlu1 %376 }
 0x3cd   : > { %380 = vst.msk [vmem:[#allocation2] sm:$0xff] %vm379_vm3, %v377_v25 }
 0x3ce   : > { %443 = vst.msk [vmem:[#allocation2] sm:$0xff] %vm442_vm4, %v440_v26 }
 0x3dc   : > { %v503_v27 = vpop.permute.xlu1 %502 }
 0x3dd   : > { %506 = vst.msk [vmem:[#allocation2] sm:$0xff] %vm505_vm5, %v503_v27 }
 0x3e4   : > { %v507_v28 = vld [vmem:[#allocation2] sm:$0xff] }
 0x3e5   : > { %v508_v29 = vpack.c.bf16 %v507_v28, %v507_v28 }
 0x3e7   : > { %684 = vmatmul.msk.bf16.vlgmr.msra.gmra.mxu0 %vm239_vm0, %v508_v29 }
 0x464   : > { %v537_v30 = vpop.f32.mrf.mxu0 }
 0x465   : > { %541 = vst.msk [vmem:[%s220_s24] sm:$0xff] %vm239_vm0, %v537_v30 }
 0x466   : > { %909 = shalt.err (!%p906_p9)
}
 0x467   : > { %703 = dma.vmem_to_hbm [thread:$0]  (%p1061_p4), %s556_s25, 128, %s558_s26, %s543_s27  }
 0x46c   : > { %v539_v31 = vpop.f32.mrf.mxu0 }
 0x46d PF: > { %s569_s10 = sand.u32 1, %s940_s12   ;;  %p1189_p10 = scmp.ge.s32.totalorder %s952_s15, 2 }
 0x46e   : > { %s570_s18 = scalar_lea.sflag [#allocation5], %s569_s10 }
 0x46f   : > { %p717_p13 = pnand %p1189_p10, %p1065_p6 }
 0x471   : > { %p718_p11 = pneg %p717_p13 }
 0x473   : > { %935 = dma.done.wait (%p718_p11), %s570_s18, 128  }
 0x474   : > { %937 = vsyncadd (%p718_p11), %s570_s18, 4294967168  ;;  %p17_p0 = scmp.ge.s32.totalorder %s1035_s4, 4   ;;  %s1190_s12 = smov %s944_s13 }
 0x475   : > { %s1191_s13 = smov %s948_s14  ;;  %s1192_s14 = smov %s1046_s7 }
 0x476   : > { %s1193_s15 = smov %s1035_s4  ;;  %19 = sbr.rel (!%p17_p0) target bundleno = 6 (0x6), region = 85 }
 0x47b   :  { %576 = vsyncpa [#allocation4], 1 }
 0x47c   :  { %578 = vsyncpa [#allocation4 + $0x1], 1 }
 0x47d   :  { %579 = vsyncpa [#allocation7], 1 }
 0x47e   :  { %580 = vsyncpa [#allocation5], 1 }
 0x47f   :  { %582 = vsyncpa [#allocation5 + $0x1], 1 }

</bundles_post_ra>
